<compile_context>
chip_gen: v7x
topology: tpu7x:2x2x1
jax: 0.10.0
libtpu: 0.0.40
codegen_flags: <defaults>
</compile_context>

<pallas_src>
import math
import numpy as np
import jax
import jax.numpy as jnp
from jax import lax
from jax.experimental import pallas as pl
from jax.experimental.pallas import tpu as pltpu

# MXU operand / activation-streaming dtype (accumulation is always f32).
# Set to jnp.float32 to track the PyTorch reference more closely at the cost
# of the slow MXU path and 2x activation HBM traffic.
MATMUL_DTYPE = jnp.bfloat16
_MIB = 1024 * 1024


def _round_up(x, m):
    return (int(x) + m - 1) // m * m


# ------------------------- hardware introspection ----------------------------
def _vmem_cap_bytes():
    try:
        info = pltpu.get_tpu_info()
        for name in ("vmem_capacity_bytes", "vmem_bytes", "vmem_size_bytes"):
            v = getattr(info, name, None)
            if isinstance(v, (int, np.integer)) and v > 0:
                return int(v)
    except Exception:
        pass
    return 64 * _MIB  # conservative default (v7x per-TensorCore)


def _num_tensorcores():
    try:
        info = pltpu.get_tpu_info()
        for name in ("num_cores", "core_count", "num_tensorcores",
                     "cores_per_chip", "tensor_cores_per_chip"):
            v = getattr(info, name, None)
            if isinstance(v, (int, np.integer)) and v > 0:
                return int(v)
    except Exception:
        pass
    try:
        if "v7" in jax.devices()[0].device_kind.lower():
            return 2
    except Exception:
        pass
    return 1  # v5e / v6e: single TensorCore


def _mosaic_params(semantics, block_bytes, scratch_bytes=0):
    """CompilerParams with an explicit scoped-VMEM limit (blocks are 2x buffered)."""
    cap = _vmem_cap_bytes()
    needed = 2 * int(block_bytes) + int(scratch_bytes)
    limit = max(needed + 16 * _MIB, 32 * _MIB)
    limit = min(limit, int(cap * 0.92))
    return pltpu.CompilerParams(dimension_semantics=semantics,
                                vmem_limit_bytes=int(limit))


# --------------------- tiled linear+bias kernel (gates_x) ---------------------
def _linear_bias_kernel(x_ref, w_ref, b_ref, o_ref):
    o_ref[...] = (jnp.dot(x_ref[...], w_ref[...],
                          preferred_element_type=jnp.float32) + b_ref[...])


def linear_bias(x, w, b, *, tile_n=512, tile_m=512):
    """x: (N, K) bf16, w: (K, M) bf16, b: (1, M) f32 -> (N, M) f32."""
    N, K = x.shape
    M = w.shape[1]
    tile_m = min(tile_m, M) if M % 128 == 0 else M
    tile_n = min(tile_n, _round_up(N, 16))
    budget = int(_vmem_cap_bytes() * 0.7)

    def blk_bytes(tn):
        return (tn * K * x.dtype.itemsize + K * tile_m * w.dtype.itemsize
                + tile_m * 4 + tn * tile_m * 4)

    while tile_n > 16 and 2 * blk_bytes(tile_n) > budget:
        tile_n = max(16, _round_up(tile_n // 2, 16))

    grid = (pl.cdiv(N, tile_n), pl.cdiv(M, tile_m))
    return pl.pallas_call(
        _linear_bias_kernel,
        out_shape=jax.ShapeDtypeStruct((N, M), jnp.float32),
        grid_spec=pltpu.PrefetchScalarGridSpec(
            num_scalar_prefetch=0,
            grid=grid,
            in_specs=[
                pl.BlockSpec((tile_n, K), lambda i, j: (i, 0)),
                pl.BlockSpec((K, tile_m), lambda i, j: (0, j)),
                pl.BlockSpec((1, tile_m), lambda i, j: (0, j)),
            ],
            out_specs=pl.BlockSpec((tile_n, tile_m), lambda i, j: (i, j)),
        ),
        compiler_params=_mosaic_params(("parallel", "parallel"),
                                       blk_bytes(tile_n)),
    )(x, w, b)


# ------------------------- LSTM recurrence (time blocks) ----------------------
def _lstm_rec_kernel(gx_ref, whh_ref, y_ref, h_scr, c_scr):
    Hp = h_scr.shape[-1]
    t_blk = gx_ref.shape[0]

    @pl.when(pl.program_id(1) == 0)
    def _():
        h_scr[...] = jnp.zeros_like(h_scr)
        c_scr[...] = jnp.zeros_like(c_scr)

    whh = whh_ref[...]  # (Hp, 4Hp), resident for the whole block

    def step(t, carry):
        h, c = carry
        # precomputed input gates + one small recurrent MXU matmul per step
        gates = gx_ref[t] + jnp.dot(h.astype(whh.dtype), whh,
                                    preferred_element_type=jnp.float32)
        i_g = jax.nn.sigmoid(gates[:, 0 * Hp:1 * Hp])
        f_g = jax.nn.sigmoid(gates[:, 1 * Hp:2 * Hp])
        g_g = jnp.tanh(gates[:, 2 * Hp:3 * Hp])
        o_g = jax.nn.sigmoid(gates[:, 3 * Hp:4 * Hp])
        c_new = f_g * c + i_g * g_g
        h_new = o_g * jnp.tanh(c_new)
        y_ref[t] = h_new.astype(y_ref.dtype)
        return h_new, c_new

    # Partial unroll: full unroll of big time blocks can spill the 64-vreg file.
    h, c = lax.fori_loop(0, t_blk, step, (h_scr[...], c_scr[...]),
                         unroll=math.gcd(t_blk, 8))
    h_scr[...] = h
    c_scr[...] = c


def lstm_layer(x_tmajor, w_ih_t, w_hh_t, b, *, num_cores=1):
    """x_tmajor: (S, Bp, E) bf16 (Bp multiple of 16) -> (S, Bp, Hp) bf16."""
    S, Bp, E = x_tmajor.shape
    Hp = w_hh_t.shape[0]

    # 1) hoisted input projection over all S*Bp rows (big pipelined MXU matmul)
    gx = linear_bias(x_tmajor.reshape(S * Bp, E), w_ih_t, b)      # (S*Bp, 4Hp) f32
    gx = gx.reshape(S, Bp, 4 * Hp)

    # 2) batch split across TensorCores ONLY on multi-TC chips (v7x).
    nb = 2 if (num_cores >= 2 and Bp % 32 == 0) else 1
    b_tile = Bp // nb

    # 3) VMEM-budget-aware time block (gx f32 + y bf16, double-buffered).
    budget = int(_vmem_cap_bytes() * 0.7)
    gx_row = b_tile * 4 * Hp * 4
    y_row = b_tile * Hp * np.dtype(MATMUL_DTYPE).itemsize
    whh_bytes = Hp * 4 * Hp * w_hh_t.dtype.itemsize
    scratch_bytes = 2 * b_tile * Hp * 4
    fixed = 2 * whh_bytes + scratch_bytes
    t_max = max(1, (budget - fixed) // (2 * (gx_row + y_row)))
    t_blk = int(min(t_max, S, 128))
    if S % t_blk != 0:
        # prefer a divisor of S (no pad) if it does not shrink the block much
        div = next((c for c in range(t_blk, 0, -1) if S % c == 0), 1)
        if div >= max(1, t_blk // 2):
            t_blk = div

    S_pad = _round_up(S, t_blk)
    if S_pad != S:
        # TODO(synk): handle the ragged last time block in-kernel to avoid this
        # HBM round-trip when no good t_blk divisor of S exists.
        gx = jnp.pad(gx, ((0, S_pad - S), (0, 0), (0, 0)))

    blk_bytes = t_blk * (gx_row + y_row) + whh_bytes

    y = pl.pallas_call(
        _lstm_rec_kernel,
        out_shape=jax.ShapeDtypeStruct((S_pad, Bp, Hp), MATMUL_DTYPE),
        grid_spec=pltpu.PrefetchScalarGridSpec(
            num_scalar_prefetch=0,
            grid=(nb, S_pad // t_blk),
            in_specs=[
                pl.BlockSpec((t_blk, b_tile, 4 * Hp), lambda bi, ti: (ti, bi, 0)),
                pl.BlockSpec((Hp, 4 * Hp), lambda bi, ti: (0, 0)),
            ],
            out_specs=pl.BlockSpec((t_blk, b_tile, Hp), lambda bi, ti: (ti, bi, 0)),
            scratch_shapes=[pltpu.VMEM((b_tile, Hp), jnp.float32),
                            pltpu.VMEM((b_tile, Hp), jnp.float32)],
        ),
        compiler_params=_mosaic_params(("parallel", "arbitrary"),
                                       blk_bytes, scratch_bytes),
    )(gx, w_hh_t)
    return y[:S] if S_pad != S else y


# ----------------------- output head kernel (share=True) ----------------------
def _head_kernel(x_ref, w1_ref, b1_ref, embt_ref, o_ref, h_scr):
    # First stage computed ONCE per row tile (j == 0) and cached in VMEM scratch.
    @pl.when(pl.program_id(1) == 0)
    def _():
        h = (jnp.dot(x_ref[...], w1_ref[...], preferred_element_type=jnp.float32)
             + b1_ref[...])
        h_scr[...] = jnp.where(h >= 0.0, h, 0.01 * h).astype(h_scr.dtype)
    # shared-weight projection: h @ token_embed.weight.T (vocab tiled / streamed)
    o_ref[...] = jnp.dot(h_scr[...], embt_ref[...],
                         preferred_element_type=jnp.float32)


def head(x, w1_t, b1, emb_t, *, tile_n=512, tile_v=512):
    """x: (N, Hp) bf16 -> (N, Vp) f32."""
    N, Hp = x.shape
    TEp, Vp = emb_t.shape
    tile_n = min(tile_n, _round_up(N, 16))
    tile_v = min(tile_v, Vp)
    budget = int(_vmem_cap_bytes() * 0.7)

    def blk_bytes(tn):
        return (tn * Hp * x.dtype.itemsize + Hp * TEp * w1_t.dtype.itemsize
                + TEp * 4 + TEp * tile_v * emb_t.dtype.itemsize + tn * tile_v * 4)

    def scr_bytes(tn):
        return tn * TEp * np.dtype(MATMUL_DTYPE).itemsize

    while tile_n > 16 and 2 * blk_bytes(tile_n) + scr_bytes(tile_n) > budget:
        tile_n = max(16, _round_up(tile_n // 2, 16))

    grid = (pl.cdiv(N, tile_n), pl.cdiv(Vp, tile_v))
    return pl.pallas_call(
        _head_kernel,
        out_shape=jax.ShapeDtypeStruct((N, Vp), jnp.float32),
        grid_spec=pltpu.PrefetchScalarGridSpec(
            num_scalar_prefetch=0,
            grid=grid,
            in_specs=[
                pl.BlockSpec((tile_n, Hp), lambda i, j: (i, 0)),
                pl.BlockSpec((Hp, TEp), lambda i, j: (0, 0)),      # resident
                pl.BlockSpec((1, TEp), lambda i, j: (0, 0)),       # resident
                pl.BlockSpec((TEp, tile_v), lambda i, j: (0, j)),  # streamed
            ],
            out_specs=pl.BlockSpec((tile_n, tile_v), lambda i, j: (i, j)),
            scratch_shapes=[pltpu.VMEM((tile_n, TEp), MATMUL_DTYPE)],
        ),
        compiler_params=_mosaic_params(("parallel", "arbitrary"),
                                       blk_bytes(tile_n), scr_bytes(tile_n)),
    )(x, w1_t, b1, emb_t)


# --------------------------------- parameters ---------------------------------
def _pad_gate_rows(w, h, hp):
    """(4h, X) -> (4hp, X): zero-pad each of the 4 stacked gate blocks to hp rows."""
    if hp == h:
        return w
    x = w.shape[1]
    return (jnp.zeros((4, hp, x), w.dtype).at[:, :h, :]
            .set(w.reshape(4, h, x)).reshape(4 * hp, x))


def _pad_gate_vec(b, h, hp):
    if hp == h:
        return b
    return (jnp.zeros((4, hp), b.dtype).at[:, :h]
            .set(b.reshape(4, h)).reshape(4 * hp))


def init_params(key, num_vocab, token_es, week_es, hour_es, dur_es,
                hidden, num_layers):
    ks = jax.random.split(key, 4 + num_layers + 2)
    Hp = _round_up(hidden, 128)   # lane-aligned hidden: gate slices & stores are
                                  # full 128-lane tiles (padded h columns stay 0)
    p = {"num_vocab": num_vocab, "hidden": hidden, "hidden_padded": Hp}

    tok_w = jax.random.uniform(
        ks[0], (num_vocab, token_es),
        minval=-0.5 / token_es, maxval=0.5 / token_es, dtype=jnp.float32)
    p["token_embed"] = tok_w
    p["week_embed"] = jax.random.normal(ks[1], (7, week_es), dtype=jnp.float32)
    p["hour_embed"] = jax.random.normal(ks[2], (24, hour_es), dtype=jnp.float32)
    p["duration_embed"] = jax.random.normal(ks[3], (24, dur_es), dtype=jnp.float32)

    E = token_es + week_es + hour_es + dur_es
    bound = 1.0 / np.sqrt(hidden)
    lstm = []
    in_size, in_size_p = E, E
    for l in range(num_layers):
        k1, k2, k3, k4 = jax.random.split(ks[4 + l], 4)
        w_ih = jax.random.uniform(k1, (4 * hidden, in_size),
                                  minval=-bound, maxval=bound, dtype=jnp.float32)
        w_hh = jax.random.uniform(k2, (4 * hidden, hidden),
                                  minval=-bound, maxval=bound, dtype=jnp.float32)
        b_ih = jax.random.uniform(k3, (4 * hidden,),
                                  minval=-bound, maxval=bound, dtype=jnp.float32)
        b_hh = jax.random.uniform(k4, (4 * hidden,),
                                  minval=-bound, maxval=bound, dtype=jnp.float32)

        w_ih_p = _pad_gate_rows(w_ih, hidden, Hp)                 # (4Hp, in_size)
        if in_size_p != in_size:
            w_ih_p = jnp.pad(w_ih_p, ((0, 0), (0, in_size_p - in_size)))
        w_hh_p = _pad_gate_rows(w_hh, hidden, Hp)                 # (4Hp, hidden)
        if Hp != hidden:
            w_hh_p = jnp.pad(w_hh_p, ((0, 0), (0, Hp - hidden)))  # (4Hp, Hp)
        b_p = _pad_gate_vec(b_ih + b_hh, hidden, Hp)              # (4Hp,)

        lstm.append({"w_ih_t": w_ih_p.T.astype(MATMUL_DTYPE),
                     "w_hh_t": w_hh_p.T.astype(MATMUL_DTYPE),
                     "b": b_p.reshape(1, 4 * Hp).astype(jnp.float32)})
        in_size, in_size_p = hidden, Hp
    p["lstm"] = lstm

    kb = 1.0 / np.sqrt(hidden)
    w1 = jax.random.uniform(ks[4 + num_layers], (token_es, hidden),
                            minval=-kb, maxval=kb, dtype=jnp.float32)
    b1 = jax.random.uniform(ks[5 + num_layers], (token_es,),
                            minval=-kb, maxval=kb, dtype=jnp.float32)

    # Lane-align the head: zero-pad token_embed_size and num_vocab to 128
    # multiples (LeakyReLU(0) = 0 so the padding contributes exactly zero).
    TEp = _round_up(token_es, 128)
    Vp = _round_up(num_vocab, 128)
    w1_t = jnp.zeros((Hp, TEp), jnp.float32).at[:hidden, :token_es].set(w1.T)
    b1_p = jnp.zeros((1, TEp), jnp.float32).at[:, :token_es].set(b1)
    emb_t = jnp.zeros((TEp, Vp), jnp.float32).at[:token_es, :num_vocab].set(tok_w.T)
    p["w1_t"] = w1_t.astype(MATMUL_DTYPE)
    p["b1"] = b1_p
    p["emb_t"] = emb_t.astype(MATMUL_DTYPE)
    return p


# --------------------------------- model glue ---------------------------------
def hier_forward(params, token, week, hour, duration, valid_len, *, num_cores=None):
    if num_cores is None:
        num_cores = _num_tensorcores()

    # HierEmbedding: gathers + concat (glue); dropout == identity at inference.
    tok_e = jnp.take(params["token_embed"], token, axis=0)
    wk_e = jnp.take(params["week_embed"], week, axis=0)
    hr_e = jnp.take(params["hour_embed"], hour, axis=0)
    du_e = jnp.take(params["duration_embed"], duration, axis=0)
    embed = jnp.concatenate([tok_e, wk_e, hr_e, du_e], axis=-1)   # (B, S, E)
    B = embed.shape[0]

    # Time-major, batch padded to a bf16-sublane multiple (16); stream bf16
    # (the MXU operands are bf16 anyway -> half the activation HBM traffic).
    x = jnp.transpose(embed, (1, 0, 2)).astype(MATMUL_DTYPE)      # (S, B, E)
    Bp = _round_up(B, 16)
    if Bp != B:
        x = jnp.pad(x, ((0, 0), (0, Bp - B), (0, 0)))

    # LSTM encoder: per layer, one big input-projection matmul + serial
    # time-block recurrence kernel (gates f32, streamed activations bf16).
    for layer in params["lstm"]:
        x = lstm_layer(x, layer["w_ih_t"], layer["w_hh_t"], layer["b"],
                       num_cores=num_cores)

    # pack_padded_sequence(enforce_sorted=False) packed ordering (vectorized).
    # TODO(synk): index construction needs concrete valid_len (host data, as in
    # PyTorch's pack_padded_sequence), so hier_forward cannot be jitted with a
    # traced valid_len (output row count is data-dependent).
    vl = np.asarray(valid_len).astype(np.int64)
    order = np.argsort(-vl, kind="stable")
    T = int(vl.max())
    step_mask = vl[order][None, :] > np.arange(T)[:, None]        # (T, B_sorted)
    tt, cc = np.nonzero(step_mask)
    t_idx = jnp.asarray(tt, dtype=jnp.int32)
    b_idx = jnp.asarray(order[cc], dtype=jnp.int32)

    # Gather valid rows BEFORE the head so padded positions pay no matmul/HBM.
    x_packed = x[t_idx, b_idx]                                    # (Np, Hp) bf16

    out = head(x_packed, params["w1_t"], params["b1"], params["emb_t"])
    return out[:, :params["num_vocab"]]          # (sum(valid_len), num_vocab)


if __name__ == "__main__":
    # Small shapes consistent with the module.
    batch, seq = 2, 8
    num_vocab, token_es = 32, 16
    week_es = hour_es = dur_es = 4
    hidden, num_layers = 32, 2

    key = jax.random.PRNGKey(0)
    pkey, k_tok, k_wk, k_hr, k_du = jax.random.split(key, 5)
    params = init_params(pkey, num_vocab, token_es, week_es, hour_es, dur_es,
                         hidden, num_layers)

    token = jax.random.randint(k_tok, (batch, seq), 0, num_vocab)
    week = jax.random.randint(k_wk, (batch, seq), 0, 7)
    hour = jax.random.randint(k_hr, (batch, seq), 0, 24)
    duration = jax.random.randint(k_du, (batch, seq), 0, 24)
    valid_len = np.array([8, 5], dtype=np.int64)

    out = hier_forward(params, token, week, hour, duration, valid_len)
    out = jax.block_until_ready(out)
    assert out.shape == (int(valid_len.sum()), num_vocab), out.shape
    assert out.dtype == jnp.float32
    assert bool(jnp.all(jnp.isfinite(out)))
    print("KERNEL_OK")
</pallas_src>

<mosaic_0001>
module attributes {stable_mosaic.version = 11 : i64} {
  func.func @_linear_bias_kernel(%arg0: i32, %arg1: i32, %arg2: memref<128x28xbf16, #tpu.memory_space<vmem>>, %arg3: memref<28x512xbf16, #tpu.memory_space<vmem>>, %arg4: memref<1x512xf32, #tpu.memory_space<vmem>>, %arg5: memref<128x512xf32, #tpu.memory_space<vmem>>) attributes {dimension_semantics = [#tpu.dimension_semantics<parallel>, #tpu.dimension_semantics<parallel>], iteration_bounds = array<i64: 1, 1>, scalar_prefetch = 0 : i64, scratch_operands = 0 : i64, tpu.core_type = #tpu.core_type<tc>, window_params = [{transform_indices = @transform_0, window_bounds = array<i64: 128, 28>}, {transform_indices = @transform_1, window_bounds = array<i64: 28, 512>}, {transform_indices = @transform_2, window_bounds = array<i64: 1, 512>}, {transform_indices = @transform_3, window_bounds = array<i64: 128, 512>}]} {
    %c0 = arith.constant 0 : index
    %c0_0 = arith.constant 0 : index
    %0 = vector.load %arg2[%c0, %c0_0] : memref<128x28xbf16, #tpu.memory_space<vmem>>, vector<128x28xbf16>
    %c0_1 = arith.constant 0 : index
    %c0_2 = arith.constant 0 : index
    %1 = vector.load %arg3[%c0_1, %c0_2] : memref<28x512xbf16, #tpu.memory_space<vmem>>, vector<28x512xbf16>
    %cst = arith.constant dense<0.000000e+00> : vector<128x512xf32>
    %2 = tpu.matmul %0, %1, %cst {dimension_numbers = #tpu.dot_dimension_numbers<[1], [0], [0], [1], [0, 0, 1, 1], [], []>} : vector<128x28xbf16>, vector<28x512xbf16>, vector<128x512xf32> -> vector<128x512xf32>
    %c0_3 = arith.constant 0 : index
    %c0_4 = arith.constant 0 : index
    %3 = vector.load %arg4[%c0_3, %c0_4] : memref<1x512xf32, #tpu.memory_space<vmem>>, vector<1x512xf32>
    %4 = vector.broadcast %3 : vector<1x512xf32> to vector<128x512xf32>
    %5 = arith.addf %2, %4 : vector<128x512xf32>
    %c0_5 = arith.constant 0 : index
    %c0_6 = arith.constant 0 : index
    %6 = vector.load %arg5[%c0_5, %c0_6] : memref<128x512xf32, #tpu.memory_space<vmem>>, vector<128x512xf32>
    tpu.vector_store %arg5[%c0_5, %c0_6], %5 {strides = array<i32>} : memref<128x512xf32, #tpu.memory_space<vmem>>, vector<128x512xf32>,
    return
  }
  func.func @transform_0(%arg0: i32, %arg1: i32) -> (i32, i32) {
    %c0_i32 = arith.constant 0 : i32
    %c0_i32_0 = arith.constant 0 : i32
    return %arg0, %c0_i32 : i32, i32
  }
  func.func @transform_1(%arg0: i32, %arg1: i32) -> (i32, i32) {
    %c0_i32 = arith.constant 0 : i32
    %c0_i32_0 = arith.constant 0 : i32
    return %c0_i32, %arg1 : i32, i32
  }
  func.func @transform_2(%arg0: i32, %arg1: i32) -> (i32, i32) {
    %c0_i32 = arith.constant 0 : i32
    %c0_i32_0 = arith.constant 0 : i32
    return %c0_i32, %arg1 : i32, i32
  }
  func.func @transform_3(%arg0: i32, %arg1: i32) -> (i32, i32) {
    %c0_i32 = arith.constant 0 : i32
    return %arg0, %arg1 : i32, i32
  }
}

</mosaic_0001>

<bundles_post_ra>
// kernel: tpu_custom_call.1
= control target key start
LH: loop header
LB: loop body
LE: loop exit
PB: predicated region body
PF: predicated region fallthrough
CT: control target
= control target key end

     0   :  { %v564_v2 = vmov 0   ;;  %vm163_vm0 = vcmask 1045504   ;;  %vm138_vm1 = vcmask 228352   ;;  %s739_s0 = inlined_call_operand.vmem [shape: bf16[128,28], index: 0, kind: input, shape index: {}]   ;;  %s740_s1 = inlined_call_operand.vmem [shape: bf16[28,512], index: 1, kind: input, shape index: {}]   ;;  %s741_s2 = inlined_call_operand.vmem [shape: f32[1,512], index: 2, kind: input, shape index: {}]   ;;  %s742_s3 = inlined_call_operand.hbm [shape: f32[128,512], index: 3, kind: output, shape index: {}]  }
   0x1   :  { %v520_v0 = vld [vmem:[%s740_s1 + $0x4] ss:$16 sps:$4 sm:$0xff]   ;;  %v522_v1 = vld [vmem:[%s740_s1 + $0xc] ss:$16 sps:$4 sm:$0xff]   ;;  %208 = vmatprep.mubr.bf16.mxu0 %v564_v2  ;;  %321 = vmatprep.mubr.bf16.mxu1 %v564_v2  ;;  %v524_v3 = vld [vmem:[%s740_s1] ss:$16 sps:$4 sm:$0xff]  }
   0x2   :  { %176 = vmatprep.subr.bf16.mxu0 %v520_v0  ;;  %v525_v4 = vld [vmem:[%s740_s1 + $0x8] ss:$16 sps:$4 sm:$0xff]   ;;  %289 = vmatprep.subr.bf16.mxu1 %v522_v1  ;;  %v526_v5 = vld [vmem:[%s740_s1 + $0x24] ss:$16 sps:$4 sm:$0x3f]  }
   0x3   :  { %177 = vmatpush1.bf16.msra.mxu0 %v524_v3  ;;  %290 = vmatpush1.bf16.msra.mxu1 %v525_v4  ;;  %v528_v6 = vld [vmem:[%s740_s1 + $0x2c] ss:$16 sps:$4 sm:$0x3f]   ;;  %v530_v7 = vld [vmem:[%s740_s1 + $0x20] ss:$16 sps:$4 sm:$0x3f]  }
   0x4   :  { %498 = vmatprep.subr.msk.bf16.mxu0 %vm163_vm0, %v526_v5  ;;  %v531_v8 = vld [vmem:[%s740_s1 + $0x28] ss:$16 sps:$4 sm:$0x3f]   ;;  %507 = vmatprep.subr.msk.bf16.mxu1 %vm163_vm0, %v528_v6  ;;  %v165_v9 = vsel %vm163_vm0, %v530_v7, 0  ;;  %v532_v11 = vld [vmem:[%s739_s0] sm:$0xff]  }
   0x5   :  { %v171_v10 = vsel %vm163_vm0, %v531_v8, 0 }
   0x7   :  { %179 = vmatpush1.bf16.msra.mxu0 %v165_v9  ;;  %292 = vmatpush1.bf16.msra.mxu1 %v171_v10 }
   0xa   :  { %499 = vmatmul.mubr.msk.bf16.vlgmr.msra.gmra.mrb[0].mxu0 %vm138_vm1, %v532_v11  ;;  %508 = vmatmul.mubr.msk.bf16.vlgmr.msra.gmra.mrb[0].mxu1 %vm138_vm1, %v532_v11 }
   0xb   :  { %218 = vmatprep.mubr.bf16.mxu0 %v564_v2  ;;  %331 = vmatprep.mubr.bf16.mxu1 %v564_v2 }
   0xc   :  { %8 = vsyncpa [#allocation3], 0  ;;  %v533_v12 = vld [vmem:[%s739_s0 + $0x8] sm:$0xff]   ;;  %v534_v13 = vld [vmem:[%s739_s0 + $0x10] sm:$0xff]   ;;  %v42_v19 = vlaneseq }
   0xd   :  { %v535_v14 = vld [vmem:[%s739_s0 + $0x18] sm:$0xff]   ;;  %v536_v15 = vld [vmem:[%s739_s0 + $0x20] sm:$0xff]   ;;  %v537_v16 = vld [vmem:[%s739_s0 + $0x28] sm:$0xff]  }
   0xe   :  { %v538_v17 = vld [vmem:[%s739_s0 + $0x30] sm:$0xff]   ;;  %v539_v18 = vld [vmem:[%s739_s0 + $0x38] sm:$0xff]   ;;  %v43_v20 = vshrl.u32 %v42_v19, 7  ;;  %v40_v23 = vld [vmem:[%s741_s2] sm:$0xf]  ;;  %s565_s0 = smov [#allocation2]  }
   0xf   :  { %s471_s2 = sshll.u32 %s565_s0, 4  ;;  %s472_s2 = int_to_ptr.vmem [resolvable:$true] %s471_s2 }
  0x10   :  { %v44_v21 = vsub.s32 0, %v43_v20  ;;  %v52_v22 = vsub.s32 2, %v43_v20  ;;  %v48_v24 = vsub.s32 1, %v43_v20  ;;  %v56_v25 = vsub.s32 3, %v43_v20  ;;  %s540_s18 = scalar_lea.vmem %s472_s2, 8192  ;;  %p545_p1 = scmp.lt.s32.totalorder %s472_s2, %s472_s2 }
  0x11   :  { %p541_p0 = scmp.ne.s32.totalorder %s472_s2, %s540_s18  ;;  %p546_p2 = scmp.lt.s32.totalorder %s540_s18, %s540_s18 }
  0x12   :  { %500 = vmatmul.mubr.msk.bf16.gmra.mrb[4].mxu0 %vm138_vm1, %v533_v12  ;;  %509 = vmatmul.mubr.msk.bf16.gmra.mrb[4].mxu1 %vm138_vm1, %v533_v12  ;;  %v655_v26 = vrot.slane %v40_v23, %v44_v21  ;;  %v657_v27 = vrot.slane %v40_v23, %v52_v22  ;;  %v659_v28 = vrot.slane %v40_v23, %v48_v24 }
  0x13   :  { %228 = vmatprep.mubr.bf16.mxu0 %v564_v2  ;;  %341 = vmatprep.mubr.bf16.mxu1 %v564_v2  ;;  %v661_v29 = vrot.slane %v40_v23, %v56_v25  ;;  %p547_p3 = por %p546_p2, %p545_p1 }
  0x15   :  { %p548_p4 = pnand %p547_p3, %p541_p0 }
  0x1a   :  { %501 = vmatmul.mubr.msk.bf16.gmra.mrb[8].mxu0 %vm138_vm1, %v534_v13  ;;  %510 = vmatmul.mubr.msk.bf16.gmra.mrb[8].mxu1 %vm138_vm1, %v534_v13 }
  0x1b   :  { %238 = vmatprep.mubr.bf16.mxu0 %v564_v2  ;;  %351 = vmatprep.mubr.bf16.mxu1 %v564_v2 }
  0x22   :  { %502 = vmatmul.mubr.msk.bf16.gmra.mrb[12].mxu0 %vm138_vm1, %v535_v14  ;;  %511 = vmatmul.mubr.msk.bf16.gmra.mrb[12].mxu1 %vm138_vm1, %v535_v14 }
  0x23   :  { %248 = vmatprep.mubr.bf16.mxu0 %v564_v2  ;;  %361 = vmatprep.mubr.bf16.mxu1 %v564_v2 }
  0x2a   :  { %503 = vmatmul.mubr.msk.bf16.gmra.mrb[16].mxu0 %vm138_vm1, %v536_v15  ;;  %512 = vmatmul.mubr.msk.bf16.gmra.mrb[16].mxu1 %vm138_vm1, %v536_v15 }
  0x2b   :  { %258 = vmatprep.mubr.bf16.mxu0 %v564_v2  ;;  %371 = vmatprep.mubr.bf16.mxu1 %v564_v2 }
  0x32   :  { %504 = vmatmul.mubr.msk.bf16.gmra.mrb[20].mxu0 %vm138_vm1, %v537_v16  ;;  %513 = vmatmul.mubr.msk.bf16.gmra.mrb[20].mxu1 %vm138_vm1, %v537_v16 }
  0x33   :  { %268 = vmatprep.mubr.bf16.mxu0 %v564_v2  ;;  %381 = vmatprep.mubr.bf16.mxu1 %v564_v2 }
  0x3a   :  { %505 = vmatmul.mubr.msk.bf16.gmra.mrb[24].mxu0 %vm138_vm1, %v538_v17  ;;  %514 = vmatmul.mubr.msk.bf16.gmra.mrb[24].mxu1 %vm138_vm1, %v538_v17 }
  0x3b   :  { %278 = vmatprep.mubr.bf16.mxu0 %v564_v2  ;;  %391 = vmatprep.mubr.bf16.mxu1 %v564_v2 }
  0x42   :  { %506 = vmatmul.mubr.msk.bf16.gmra.mrb[28].mxu0 %vm138_vm1, %v539_v18  ;;  %515 = vmatmul.mubr.msk.bf16.gmra.mrb[28].mxu1 %vm138_vm1, %v539_v18 }
  0xdd   :  { %v210_v30 = vpop.f32.mrb[0].mxu0  ;;  %v323_v31 = vpop.f32.mrb[0].mxu1 }
  0xde   :  { %v211_v32 = vadd.f32 %v210_v30, %v655_v26  ;;  %v324_v33 = vadd.f32 %v323_v31, %v657_v27  ;;  %v212_v34 = vpop.f32.mrb[1].mxu0  ;;  %v325_v35 = vpop.f32.mrb[1].mxu1 }
  0xdf   :  { %v213_v36 = vadd.f32 %v212_v34, %v659_v28  ;;  %v326_v37 = vadd.f32 %v325_v35, %v661_v29  ;;  %v214_v38 = vpop.f32.mrb[2].mxu0  ;;  %v327_v39 = vpop.f32.mrb[2].mxu1 }
  0xe0   :  { %402 = vst [vmem:[#allocation2] sm:$0xff] %v211_v32  ;;  %404 = vst [vmem:[#allocation2 + $0x10] sm:$0xff] %v324_v33  ;;  %v215_v40 = vadd.f32 %v214_v38, %v655_v26  ;;  %v328_v41 = vadd.f32 %v327_v39, %v657_v27  ;;  %v216_v42 = vpop.f32.mrb[3].mxu0  ;;  %v329_v43 = vpop.f32.mrb[3].mxu1 }
  0xe1   :  { %403 = vst [vmem:[#allocation2 + $0x8] sm:$0xff] %v213_v36  ;;  %405 = vst [vmem:[#allocation2 + $0x18] sm:$0xff] %v326_v37  ;;  %v217_v44 = vadd.f32 %v216_v42, %v659_v28  ;;  %v330_v45 = vadd.f32 %v329_v43, %v661_v29 }
  0xe2   :  { %406 = vst [vmem:[#allocation2 + $0x20] sm:$0xff] %v215_v40  ;;  %408 = vst [vmem:[#allocation2 + $0x30] sm:$0xff] %v328_v41 }
  0xe3   :  { %407 = vst [vmem:[#allocation2 + $0x28] sm:$0xff] %v217_v44  ;;  %409 = vst [vmem:[#allocation2 + $0x38] sm:$0xff] %v330_v45 }
  0xe5   :  { %v220_v46 = vpop.f32.mrb[4].mxu0  ;;  %v333_v47 = vpop.f32.mrb[4].mxu1 }
  0xe6   :  { %v221_v48 = vadd.f32 %v220_v46, %v655_v26  ;;  %v334_v49 = vadd.f32 %v333_v47, %v657_v27  ;;  %v222_v50 = vpop.f32.mrb[5].mxu0  ;;  %v335_v51 = vpop.f32.mrb[5].mxu1 }
  0xe7   :  { %v223_v52 = vadd.f32 %v222_v50, %v659_v28  ;;  %v336_v53 = vadd.f32 %v335_v51, %v661_v29  ;;  %v224_v54 = vpop.f32.mrb[6].mxu0  ;;  %v337_v55 = vpop.f32.mrb[6].mxu1 }
  0xe8   :  { %410 = vst [vmem:[#allocation2 + $0x40] sm:$0xff] %v221_v48  ;;  %412 = vst [vmem:[#allocation2 + $0x50] sm:$0xff] %v334_v49  ;;  %v225_v56 = vadd.f32 %v224_v54, %v655_v26  ;;  %v338_v57 = vadd.f32 %v337_v55, %v657_v27  ;;  %v226_v58 = vpop.f32.mrb[7].mxu0  ;;  %v339_v59 = vpop.f32.mrb[7].mxu1 }
  0xe9   :  { %411 = vst [vmem:[#allocation2 + $0x48] sm:$0xff] %v223_v52  ;;  %413 = vst [vmem:[#allocation2 + $0x58] sm:$0xff] %v336_v53  ;;  %v227_v60 = vadd.f32 %v226_v58, %v659_v28  ;;  %v340_v61 = vadd.f32 %v339_v59, %v661_v29 }
  0xea   :  { %414 = vst [vmem:[#allocation2 + $0x60] sm:$0xff] %v225_v56  ;;  %416 = vst [vmem:[#allocation2 + $0x70] sm:$0xff] %v338_v57 }
  0xeb   :  { %415 = vst [vmem:[#allocation2 + $0x68] sm:$0xff] %v227_v60  ;;  %417 = vst [vmem:[#allocation2 + $0x78] sm:$0xff] %v340_v61 }
  0xed   :  { %v230_v62 = vpop.f32.mrb[8].mxu0  ;;  %v343_v63 = vpop.f32.mrb[8].mxu1 }
  0xee   :  { %v231_v0 = vadd.f32 %v230_v62, %v655_v26  ;;  %v344_v1 = vadd.f32 %v343_v63, %v657_v27  ;;  %v232_v2 = vpop.f32.mrb[9].mxu0  ;;  %v345_v3 = vpop.f32.mrb[9].mxu1 }
  0xef   :  { %v233_v4 = vadd.f32 %v232_v2, %v659_v28  ;;  %v346_v5 = vadd.f32 %v345_v3, %v661_v29  ;;  %v234_v6 = vpop.f32.mrb[10].mxu0  ;;  %v347_v7 = vpop.f32.mrb[10].mxu1 }
  0xf0   :  { %418 = vst [vmem:[#allocation2 + $0x80] sm:$0xff] %v231_v0  ;;  %420 = vst [vmem:[#allocation2 + $0x90] sm:$0xff] %v344_v1  ;;  %v235_v8 = vadd.f32 %v234_v6, %v655_v26  ;;  %v348_v9 = vadd.f32 %v347_v7, %v657_v27  ;;  %v236_v10 = vpop.f32.mrb[11].mxu0  ;;  %v349_v11 = vpop.f32.mrb[11].mxu1 }
  0xf1   :  { %419 = vst [vmem:[#allocation2 + $0x88] sm:$0xff] %v233_v4  ;;  %421 = vst [vmem:[#allocation2 + $0x98] sm:$0xff] %v346_v5  ;;  %v237_v12 = vadd.f32 %v236_v10, %v659_v28  ;;  %v350_v13 = vadd.f32 %v349_v11, %v661_v29 }
  0xf2   :  { %422 = vst [vmem:[#allocation2 + $0xa0] sm:$0xff] %v235_v8  ;;  %424 = vst [vmem:[#allocation2 + $0xb0] sm:$0xff] %v348_v9 }
  0xf3   :  { %423 = vst [vmem:[#allocation2 + $0xa8] sm:$0xff] %v237_v12  ;;  %425 = vst [vmem:[#allocation2 + $0xb8] sm:$0xff] %v350_v13 }
  0xf5   :  { %v240_v14 = vpop.f32.mrb[12].mxu0  ;;  %v353_v15 = vpop.f32.mrb[12].mxu1 }
  0xf6   :  { %v241_v16 = vadd.f32 %v240_v14, %v655_v26  ;;  %v354_v17 = vadd.f32 %v353_v15, %v657_v27  ;;  %v242_v18 = vpop.f32.mrb[13].mxu0  ;;  %v355_v19 = vpop.f32.mrb[13].mxu1 }
  0xf7   :  { %v243_v20 = vadd.f32 %v242_v18, %v659_v28  ;;  %v356_v21 = vadd.f32 %v355_v19, %v661_v29  ;;  %v244_v22 = vpop.f32.mrb[14].mxu0  ;;  %v357_v23 = vpop.f32.mrb[14].mxu1 }
  0xf8   :  { %426 = vst [vmem:[#allocation2 + $0xc0] sm:$0xff] %v241_v16  ;;  %428 = vst [vmem:[#allocation2 + $0xd0] sm:$0xff] %v354_v17  ;;  %v245_v24 = vadd.f32 %v244_v22, %v655_v26  ;;  %v358_v25 = vadd.f32 %v357_v23, %v657_v27  ;;  %v246_v30 = vpop.f32.mrb[15].mxu0  ;;  %v359_v31 = vpop.f32.mrb[15].mxu1 }
  0xf9   :  { %427 = vst [vmem:[#allocation2 + $0xc8] sm:$0xff] %v243_v20  ;;  %429 = vst [vmem:[#allocation2 + $0xd8] sm:$0xff] %v356_v21  ;;  %v247_v32 = vadd.f32 %v246_v30, %v659_v28  ;;  %v360_v33 = vadd.f32 %v359_v31, %v661_v29 }
  0xfa   :  { %430 = vst [vmem:[#allocation2 + $0xe0] sm:$0xff] %v245_v24  ;;  %432 = vst [vmem:[#allocation2 + $0xf0] sm:$0xff] %v358_v25 }
  0xfb   :  { %431 = vst [vmem:[#allocation2 + $0xe8] sm:$0xff] %v247_v32  ;;  %433 = vst [vmem:[#allocation2 + $0xf8] sm:$0xff] %v360_v33 }
  0xfd   :  { %v250_v34 = vpop.f32.mrb[16].mxu0  ;;  %v363_v35 = vpop.f32.mrb[16].mxu1 }
  0xfe   :  { %v251_v36 = vadd.f32 %v250_v34, %v655_v26  ;;  %v364_v37 = vadd.f32 %v363_v35, %v657_v27  ;;  %v252_v38 = vpop.f32.mrb[17].mxu0  ;;  %v365_v39 = vpop.f32.mrb[17].mxu1 }
  0xff   :  { %v253_v40 = vadd.f32 %v252_v38, %v659_v28  ;;  %v366_v41 = vadd.f32 %v365_v39, %v661_v29  ;;  %v254_v42 = vpop.f32.mrb[18].mxu0  ;;  %v367_v43 = vpop.f32.mrb[18].mxu1 }
 0x100   :  { %434 = vst [vmem:[#allocation2 + $0x100] sm:$0xff] %v251_v36  ;;  %436 = vst [vmem:[#allocation2 + $0x110] sm:$0xff] %v364_v37  ;;  %v255_v44 = vadd.f32 %v254_v42, %v655_v26  ;;  %v368_v45 = vadd.f32 %v367_v43, %v657_v27  ;;  %v256_v46 = vpop.f32.mrb[19].mxu0  ;;  %v369_v47 = vpop.f32.mrb[19].mxu1 }
 0x101   :  { %435 = vst [vmem:[#allocation2 + $0x108] sm:$0xff] %v253_v40  ;;  %437 = vst [vmem:[#allocation2 + $0x118] sm:$0xff] %v366_v41  ;;  %v257_v48 = vadd.f32 %v256_v46, %v659_v28  ;;  %v370_v49 = vadd.f32 %v369_v47, %v661_v29 }
 0x102   :  { %438 = vst [vmem:[#allocation2 + $0x120] sm:$0xff] %v255_v44  ;;  %440 = vst [vmem:[#allocation2 + $0x130] sm:$0xff] %v368_v45 }
 0x103   :  { %439 = vst [vmem:[#allocation2 + $0x128] sm:$0xff] %v257_v48  ;;  %441 = vst [vmem:[#allocation2 + $0x138] sm:$0xff] %v370_v49 }
 0x105   :  { %v260_v50 = vpop.f32.mrb[20].mxu0  ;;  %v373_v51 = vpop.f32.mrb[20].mxu1 }
 0x106   :  { %v261_v52 = vadd.f32 %v260_v50, %v655_v26  ;;  %v374_v53 = vadd.f32 %v373_v51, %v657_v27  ;;  %v262_v54 = vpop.f32.mrb[21].mxu0  ;;  %v375_v55 = vpop.f32.mrb[21].mxu1 }
 0x107   :  { %v263_v56 = vadd.f32 %v262_v54, %v659_v28  ;;  %v376_v57 = vadd.f32 %v375_v55, %v661_v29  ;;  %v264_v58 = vpop.f32.mrb[22].mxu0  ;;  %v377_v59 = vpop.f32.mrb[22].mxu1 }
 0x108   :  { %442 = vst [vmem:[#allocation2 + $0x140] sm:$0xff] %v261_v52  ;;  %444 = vst [vmem:[#allocation2 + $0x150] sm:$0xff] %v374_v53  ;;  %v265_v60 = vadd.f32 %v264_v58, %v655_v26  ;;  %v378_v61 = vadd.f32 %v377_v59, %v657_v27  ;;  %v266_v62 = vpop.f32.mrb[23].mxu0  ;;  %v379_v63 = vpop.f32.mrb[23].mxu1 }
 0x109   :  { %443 = vst [vmem:[#allocation2 + $0x148] sm:$0xff] %v263_v56  ;;  %445 = vst [vmem:[#allocation2 + $0x158] sm:$0xff] %v376_v57  ;;  %v267_v0 = vadd.f32 %v266_v62, %v659_v28  ;;  %v380_v1 = vadd.f32 %v379_v63, %v661_v29 }
 0x10a   :  { %446 = vst [vmem:[#allocation2 + $0x160] sm:$0xff] %v265_v60  ;;  %448 = vst [vmem:[#allocation2 + $0x170] sm:$0xff] %v378_v61 }
 0x10b   :  { %447 = vst [vmem:[#allocation2 + $0x168] sm:$0xff] %v267_v0  ;;  %449 = vst [vmem:[#allocation2 + $0x178] sm:$0xff] %v380_v1 }
 0x10d   :  { %v270_v2 = vpop.f32.mrb[24].mxu0  ;;  %v383_v3 = vpop.f32.mrb[24].mxu1 }
 0x10e   :  { %v271_v4 = vadd.f32 %v270_v2, %v655_v26  ;;  %v384_v5 = vadd.f32 %v383_v3, %v657_v27  ;;  %v272_v6 = vpop.f32.mrb[25].mxu0  ;;  %v385_v7 = vpop.f32.mrb[25].mxu1 }
 0x10f   :  { %v273_v8 = vadd.f32 %v272_v6, %v659_v28  ;;  %v386_v9 = vadd.f32 %v385_v7, %v661_v29  ;;  %v274_v10 = vpop.f32.mrb[26].mxu0  ;;  %v387_v11 = vpop.f32.mrb[26].mxu1 }
 0x110   :  { %450 = vst [vmem:[#allocation2 + $0x180] sm:$0xff] %v271_v4  ;;  %452 = vst [vmem:[#allocation2 + $0x190] sm:$0xff] %v384_v5  ;;  %v275_v12 = vadd.f32 %v274_v10, %v655_v26  ;;  %v388_v13 = vadd.f32 %v387_v11, %v657_v27  ;;  %v276_v14 = vpop.f32.mrb[27].mxu0  ;;  %v389_v15 = vpop.f32.mrb[27].mxu1 }
 0x111   :  { %451 = vst [vmem:[#allocation2 + $0x188] sm:$0xff] %v273_v8  ;;  %453 = vst [vmem:[#allocation2 + $0x198] sm:$0xff] %v386_v9  ;;  %v277_v16 = vadd.f32 %v276_v14, %v659_v28  ;;  %v390_v17 = vadd.f32 %v389_v15, %v661_v29 }
 0x112   :  { %454 = vst [vmem:[#allocation2 + $0x1a0] sm:$0xff] %v275_v12  ;;  %456 = vst [vmem:[#allocation2 + $0x1b0] sm:$0xff] %v388_v13 }
 0x113   :  { %455 = vst [vmem:[#allocation2 + $0x1a8] sm:$0xff] %v277_v16  ;;  %457 = vst [vmem:[#allocation2 + $0x1b8] sm:$0xff] %v390_v17 }
 0x115   :  { %v280_v18 = vpop.f32.mrb[28].mxu0  ;;  %v393_v19 = vpop.f32.mrb[28].mxu1 }
 0x116   :  { %v281_v20 = vadd.f32 %v280_v18, %v655_v26  ;;  %v394_v21 = vadd.f32 %v393_v19, %v657_v27  ;;  %v282_v22 = vpop.f32.mrb[29].mxu0  ;;  %v395_v23 = vpop.f32.mrb[29].mxu1 }
 0x117   :  { %v283_v24 = vadd.f32 %v282_v22, %v659_v28  ;;  %v396_v25 = vadd.f32 %v395_v23, %v661_v29  ;;  %v284_v30 = vpop.f32.mrb[30].mxu0  ;;  %v397_v31 = vpop.f32.mrb[30].mxu1 }
 0x118   :  { %458 = vst [vmem:[#allocation2 + $0x1c0] sm:$0xff] %v281_v20  ;;  %460 = vst [vmem:[#allocation2 + $0x1d0] sm:$0xff] %v394_v21  ;;  %v285_v32 = vadd.f32 %v284_v30, %v655_v26  ;;  %v398_v33 = vadd.f32 %v397_v31, %v657_v27  ;;  %v286_v34 = vpop.f32.mrb[31].mxu0  ;;  %v399_v35 = vpop.f32.mrb[31].mxu1 }
 0x119   :  { %459 = vst [vmem:[#allocation2 + $0x1c8] sm:$0xff] %v283_v24  ;;  %461 = vst [vmem:[#allocation2 + $0x1d8] sm:$0xff] %v396_v25  ;;  %v287_v36 = vadd.f32 %v286_v34, %v659_v28  ;;  %v400_v37 = vadd.f32 %v399_v35, %v661_v29 }
 0x11a   :  { %462 = vst [vmem:[#allocation2 + $0x1e0] sm:$0xff] %v285_v32  ;;  %464 = vst [vmem:[#allocation2 + $0x1f0] sm:$0xff] %v398_v33 }
 0x11b   :  { %463 = vst [vmem:[#allocation2 + $0x1e8] sm:$0xff] %v287_v36  ;;  %465 = vst [vmem:[#allocation2 + $0x1f8] sm:$0xff] %v400_v37 }
 0x11c   :  { %551 = shalt.err (!%p548_p4)
}
 0x11d   :  { %s552_s21 = scalar_lea.hbm %s742_s3, 8192 }
 0x11e   :  { %p553_p5 = scmp.ne.s32.totalorder %s742_s3, %s552_s21  ;;  %p556_p6 = scmp.lt.u32.totalorder %s552_s21, %s742_s3 }
 0x120   :  { %p558_p7 = pnand %p556_p6, %p553_p5 }
 0x122   :  { %561 = shalt.err (!%p558_p7)
}
 0x123   :  { %s566_s26 = smov 512   ;;  %s567_s27 = smov 32  }
 0x124   :  { %477 = dma.vmem_to_hbm [thread:$0]  %s472_s2, 8192, %s742_s3, [#allocation3], %s566_s26, %s566_s26, %s567_s27  }
 0x125   :  { %562 = dma.done.wait [#allocation3], 8192  }
 0x126   :  { %563 = vsyncadd [#allocation3], 4294959104 }
 0x127   :  { %481 = vsyncpa [#allocation3], 1 }

</bundles_post_ra>
